<compile_context>
chip_gen: v7x
topology: tpu7x:2x2x1
jax: 0.10.0
libtpu: 0.0.40
codegen_flags: <defaults>
</compile_context>

<pallas_src>
import functools

import jax
import jax.numpy as jnp
from jax.experimental import pallas as pl
from jax.experimental.pallas import tpu as pltpu


D_MODEL = 32
D_FF = 128


def _round_up(x, m):
    return ((x + m - 1) // m) * m


def _block_diag(w, pack):
    """diag(w, w, ..., w) with `pack` copies of w on the diagonal."""
    d_in, d_out = w.shape
    eye = jnp.eye(pack, dtype=w.dtype)
    return jnp.einsum("ab,ij->aibj", eye, w).reshape(pack * d_in, pack * d_out)


# ----------------------------------------------------------------------------
# Fused FFN kernel: one (TM, pack*d_model) packed row tile per grid step.
# ----------------------------------------------------------------------------
def _ffn_kernel(x_ref, w1_ref, b1_ref, w2_ref, b2_ref, o_ref):
    # bf16 operands on the MXU, f32 accumulation.
    x = x_ref[...].astype(jnp.bfloat16)                              # (TM, P*dm)

    h = jnp.dot(x, w1_ref[...], preferred_element_type=jnp.float32)  # (TM, P*df)
    h = jnp.maximum(h + b1_ref[...].astype(jnp.float32), 0.0)

    # TODO(synk): dropout(p=0.1) is identity in eval mode; training-mode
    # stochastic masking (pltpu.prng_seed / prng_random_bits) not implemented.

    out = jnp.dot(h.astype(jnp.bfloat16), w2_ref[...],
                  preferred_element_type=jnp.float32)                # (TM, P*dm)
    out = out + b2_ref[...].astype(jnp.float32)

    o_ref[...] = out.astype(o_ref.dtype)


@functools.partial(jax.jit, static_argnames=("tile_rows",))
def ffn_pallas(x, w1, b1, w2, b2, *, tile_rows=2048):
    """PositionwiseFeedForward forward pass.

    x:  (B, S, d_model)
    w1: (d_model, d_ff)   b1: (d_ff,)     (already transposed vs torch Linear)
    w2: (d_ff, d_model)   b2: (d_model,)
    """
    b, s, d_model = x.shape
    d_ff = w1.shape[1]
    rows = b * s

    # Lane-packing factor: fold `pack` consecutive rows into one 128-lane row.
    pack = 128 // d_model if (d_model <= 128 and 128 % d_model == 0) else 1
    while pack > 1 and rows % pack:
        pack //= 2

    rows_p = rows // pack
    dm_p = pack * d_model
    df_p = pack * d_ff

    x2 = x.reshape(rows_p, dm_p)                     # free row-major repack

    # Packed block-diagonal weights (bf16 for the MXU), tiled biases (f32).
    w1p = _block_diag(w1, pack).astype(jnp.bfloat16)
    w2p = _block_diag(w2, pack).astype(jnp.bfloat16)
    b1p = jnp.tile(b1, pack).reshape(1, df_p).astype(jnp.float32)
    b2p = jnp.tile(b2, pack).reshape(1, dm_p).astype(jnp.float32)

    # Row tile: large (amortize per-step overhead) but aim for >=2 grid steps
    # so both v7x TensorCores get work.  Ragged last block is masked by
    # Pallas (rows are independent, so tail garbage is never written).
    tm = min(_round_up(tile_rows, 8), _round_up(pl.cdiv(rows_p, 2), 8))
    if tm >= rows_p:
        tm = rows_p                                  # single full-extent block
    grid = pl.cdiv(rows_p, tm)

    out2 = pl.pallas_call(
        _ffn_kernel,
        out_shape=jax.ShapeDtypeStruct((rows_p, dm_p), x.dtype),
        grid_spec=pltpu.PrefetchScalarGridSpec(
            num_scalar_prefetch=0,
            grid=(grid,),
            in_specs=[
                pl.BlockSpec((tm, dm_p), lambda i: (i, 0)),      # x tile
                pl.BlockSpec((dm_p, df_p), lambda i: (0, 0)),    # W1' (resident)
                pl.BlockSpec((1, df_p), lambda i: (0, 0)),       # b1' (resident)
                pl.BlockSpec((df_p, dm_p), lambda i: (0, 0)),    # W2' (resident)
                pl.BlockSpec((1, dm_p), lambda i: (0, 0)),       # b2' (resident)
            ],
            out_specs=pl.BlockSpec((tm, dm_p), lambda i: (i, 0)),
        ),
        compiler_params=pltpu.CompilerParams(
            dimension_semantics=("parallel",)),
    )(x2, w1p, b1p, w2p, b2p)

    return out2.reshape(b, s, d_model)


def init_params(key, d_model=D_MODEL, d_ff=D_FF):
    k1, k2, k3, k4 = jax.random.split(key, 4)
    # nn.Linear default init: U(-1/sqrt(fan_in), 1/sqrt(fan_in))
    lim1 = 1.0 / (d_model ** 0.5)
    lim2 = 1.0 / (d_ff ** 0.5)
    return {
        "w1": jax.random.uniform(k1, (d_model, d_ff), jnp.float32, -lim1, lim1),
        "b1": jax.random.uniform(k2, (d_ff,), jnp.float32, -lim1, lim1),
        "w2": jax.random.uniform(k3, (d_ff, d_model), jnp.float32, -lim2, lim2),
        "b2": jax.random.uniform(k4, (d_model,), jnp.float32, -lim2, lim2),
    }


if __name__ == "__main__":
    key = jax.random.PRNGKey(0)
    kx, kp = jax.random.split(key)

    B, S = 2, 8
    x = jax.random.normal(kx, (B, S, D_MODEL), dtype=jnp.float32)
    params = init_params(kp)

    out = ffn_pallas(x, params["w1"], params["b1"], params["w2"], params["b2"])
    out = jax.block_until_ready(out)

    # pure-JAX f32 reference (dropout is identity in eval mode)
    h_ref = jnp.maximum(
        jnp.einsum("bsd,df->bsf", x, params["w1"]) + params["b1"], 0.0)
    ref = jnp.einsum("bsf,fd->bsd", h_ref, params["w2"]) + params["b2"]

    assert out.shape == (B, S, D_MODEL)
    max_err = float(jnp.max(jnp.abs(out - ref)))
    # bf16 MXU operands with f32 accumulation -> looser tolerance than pure f32
    assert jnp.allclose(out, ref, atol=5e-2, rtol=5e-2), max_err

    print("KERNEL_OK")
</pallas_src>

<mosaic_0001>
module attributes {stable_mosaic.version = 11 : i64} {
  func.func @_ffn_kernel(%arg0: i32, %arg1: memref<4x128xf32, #tpu.memory_space<vmem>>, %arg2: memref<128x512xbf16, #tpu.memory_space<vmem>>, %arg3: memref<1x512xf32, #tpu.memory_space<vmem>>, %arg4: memref<512x128xbf16, #tpu.memory_space<vmem>>, %arg5: memref<1x128xf32, #tpu.memory_space<vmem>>, %arg6: memref<4x128xf32, #tpu.memory_space<vmem>>) attributes {dimension_semantics = [#tpu.dimension_semantics<parallel>], iteration_bounds = array<i64: 1>, scalar_prefetch = 0 : i64, scratch_operands = 0 : i64, tpu.core_type = #tpu.core_type<tc>, window_params = [{transform_indices = @transform_0, window_bounds = array<i64: 4, 128>}, {pipeline_mode = #tpu.pipeline_mode<synchronous>, transform_indices = @transform_1, window_bounds = array<i64: 128, 512>}, {pipeline_mode = #tpu.pipeline_mode<synchronous>, transform_indices = @transform_2, window_bounds = array<i64: 1, 512>}, {pipeline_mode = #tpu.pipeline_mode<synchronous>, transform_indices = @transform_3, window_bounds = array<i64: 512, 128>}, {pipeline_mode = #tpu.pipeline_mode<synchronous>, transform_indices = @transform_4, window_bounds = array<i64: 1, 128>}, {transform_indices = @transform_5, window_bounds = array<i64: 4, 128>}]} {
    %c0 = arith.constant 0 : index
    %c0_0 = arith.constant 0 : index
    %0 = vector.load %arg1[%c0, %c0_0] : memref<4x128xf32, #tpu.memory_space<vmem>>, vector<4x128xf32>
    %1 = arith.truncf %0 : vector<4x128xf32> to vector<4x128xbf16>
    %c0_1 = arith.constant 0 : index
    %c0_2 = arith.constant 0 : index
    %2 = vector.load %arg2[%c0_1, %c0_2] : memref<128x512xbf16, #tpu.memory_space<vmem>>, vector<128x512xbf16>
    %cst = arith.constant dense<0.000000e+00> : vector<4x512xf32>
    %3 = tpu.matmul %1, %2, %cst {dimension_numbers = #tpu.dot_dimension_numbers<[1], [0], [0], [1], [0, 0, 1, 1], [], []>} : vector<4x128xbf16>, vector<128x512xbf16>, vector<4x512xf32> -> vector<4x512xf32>
    %c0_3 = arith.constant 0 : index
    %c0_4 = arith.constant 0 : index
    %4 = vector.load %arg3[%c0_3, %c0_4] : memref<1x512xf32, #tpu.memory_space<vmem>>, vector<1x512xf32>
    %5 = vector.broadcast %4 : vector<1x512xf32> to vector<4x512xf32>
    %6 = arith.addf %3, %5 : vector<4x512xf32>
    %cst_5 = arith.constant 0.000000e+00 : f32
    %7 = vector.broadcast %cst_5 : f32 to vector<4x512xf32>
    %8 = arith.maximumf %6, %7 : vector<4x512xf32>
    %9 = arith.truncf %8 : vector<4x512xf32> to vector<4x512xbf16>
    %c0_6 = arith.constant 0 : index
    %c0_7 = arith.constant 0 : index
    %10 = vector.load %arg4[%c0_6, %c0_7] : memref<512x128xbf16, #tpu.memory_space<vmem>>, vector<512x128xbf16>
    %cst_8 = arith.constant dense<0.000000e+00> : vector<4x128xf32>
    %11 = tpu.matmul %9, %10, %cst_8 {dimension_numbers = #tpu.dot_dimension_numbers<[1], [0], [0], [1], [0, 0, 1, 1], [], []>} : vector<4x512xbf16>, vector<512x128xbf16>, vector<4x128xf32> -> vector<4x128xf32>
    %c0_9 = arith.constant 0 : index
    %c0_10 = arith.constant 0 : index
    %12 = vector.load %arg5[%c0_9, %c0_10] : memref<1x128xf32, #tpu.memory_space<vmem>>, vector<1x128xf32>
    %13 = vector.broadcast %12 : vector<1x128xf32> to vector<4x128xf32>
    %14 = arith.addf %11, %13 : vector<4x128xf32>
    %c0_11 = arith.constant 0 : index
    %c0_12 = arith.constant 0 : index
    %15 = vector.load %arg6[%c0_11, %c0_12] : memref<4x128xf32, #tpu.memory_space<vmem>>, vector<4x128xf32>
    tpu.vector_store %arg6[%c0_11, %c0_12], %14 {strides = array<i32>} : memref<4x128xf32, #tpu.memory_space<vmem>>, vector<4x128xf32>,
    return
  }
  func.func @transform_0(%arg0: i32) -> (i32, i32) {
    %c0_i32 = arith.constant 0 : i32
    %c0_i32_0 = arith.constant 0 : i32
    return %arg0, %c0_i32 : i32, i32
  }
  func.func @transform_1(%arg0: i32) -> (i32, i32) {
    %c0_i32 = arith.constant 0 : i32
    %c0_i32_0 = arith.constant 0 : i32
    %c0_i32_1 = arith.constant 0 : i32
    return %c0_i32, %c0_i32_0 : i32, i32
  }
  func.func @transform_2(%arg0: i32) -> (i32, i32) {
    %c0_i32 = arith.constant 0 : i32
    %c0_i32_0 = arith.constant 0 : i32
    %c0_i32_1 = arith.constant 0 : i32
    return %c0_i32, %c0_i32_0 : i32, i32
  }
  func.func @transform_3(%arg0: i32) -> (i32, i32) {
    %c0_i32 = arith.constant 0 : i32
    %c0_i32_0 = arith.constant 0 : i32
    %c0_i32_1 = arith.constant 0 : i32
    return %c0_i32, %c0_i32_0 : i32, i32
  }
  func.func @transform_4(%arg0: i32) -> (i32, i32) {
    %c0_i32 = arith.constant 0 : i32
    %c0_i32_0 = arith.constant 0 : i32
    %c0_i32_1 = arith.constant 0 : i32
    return %c0_i32, %c0_i32_0 : i32, i32
  }
  func.func @transform_5(%arg0: i32) -> (i32, i32) {
    %c0_i32 = arith.constant 0 : i32
    %c0_i32_0 = arith.constant 0 : i32
    return %arg0, %c0_i32 : i32, i32
  }
}

</mosaic_0001>

<bundles_post_ra>
// kernel: tile.18
= control target key start
LH: loop header
LB: loop body
LE: loop exit
PB: predicated region body
PF: predicated region fallthrough
CT: control target
= control target key end

     0   :  { %s22_s0 = inlined_call_operand.vmem [shape: f32[32], index: 0, kind: input, shape index: {}]   ;;  %s23_s1 = inlined_call_operand.vmem [shape: f32[4,32], index: 1, kind: output, shape index: {}]  }
   0x1   :  { %v4_v0 = vld [vmem:[%s22_s0] ss:$0 sm:$0xff] }
   0x2   :  { %5 = vst [vmem:[%s23_s1] sm:$0xf] %v4_v0 }

// kernel: tile.19
= control target key start
LH: loop header
LB: loop body
LE: loop exit
PB: predicated region body
PF: predicated region fallthrough
CT: control target
= control target key end

     0   :  { %vm7_vm0 = vcmask 261120   ;;  %s37_s8 = smov 32   ;;  %s38_s9 = smov 64   ;;  %vm13_vm1 = vcmask 1048320   ;;  %vm19_vm2 = vcmask 785920   ;;  %vm25_vm3 = vcmask 523520   ;;  %s55_s0 = inlined_call_operand.vmem [shape: f32[4,32], index: 0, kind: input, shape index: {}]   ;;  %s56_s1 = inlined_call_operand.vmem [shape: f32[1,128], index: 1, kind: output, shape index: {}]  }
   0x1   :  { %v4_v0 = vld [vmem:[%s55_s0] sm:$0xf]  ;;  %s36_s0 = smov 96  }
   0x2   :  { %5 = vst [vmem:[#allocation1] sm:$0xf] %v4_v0 }
   0x9   :  { %v10_v1 = vld [vmem:[#allocation1 + $0x3] sm:$0x1]   ;;  %v22_v2 = vld [vmem:[#allocation1 + $0x1] sm:$0x1]   ;;  %v6_v3 = vld [vmem:[#allocation1] sm:$0x1]  }
   0xa   :  { %11 = vrot.lane.b32.xlu0 %v10_v1, %s36_s0  ;;  %23 = vrot.lane.b32.xlu1 %v22_v2, %s37_s8  ;;  %v16_v4 = vld [vmem:[#allocation1 + $0x2] sm:$0x1]   ;;  %8 = vst.msk [vmem:[#allocation0] sm:$0x1] %vm7_vm0, %v6_v3  }
   0xe   :  { %17 = vrot.lane.b32.xlu0 %v16_v4, %s38_s9 }
  0x7c   :  { %v12_v5 = vpop.permute.xlu0 %11   ;;  %v24_v6 = vpop.permute.xlu1 %23  }
  0x7d   :  { %14 = vst.msk [vmem:[#allocation0] sm:$0x1] %vm13_vm1, %v12_v5  }
  0x80   :  { %v18_v7 = vpop.permute.xlu0 %17  }
  0x81   :  { %20 = vst.msk [vmem:[#allocation0] sm:$0x1] %vm19_vm2, %v18_v7  }
  0x82   :  { %26 = vst.msk [vmem:[#allocation0] sm:$0x1] %vm25_vm3, %v24_v6  }
  0x89   :  { %v30_v8 = vld [vmem:[#allocation0] sm:$0x1] }
  0x8a   :  { %32 = vst [vmem:[%s56_s1] sm:$0x1] %v30_v8 }

// kernel: tile.13
= control target key start
LH: loop header
LB: loop body
LE: loop exit
PB: predicated region body
PF: predicated region fallthrough
CT: control target
= control target key end

     0   :  { %s22_s0 = inlined_call_operand.vmem [shape: f32[128], index: 0, kind: input, shape index: {}]   ;;  %s23_s1 = inlined_call_operand.vmem [shape: f32[4,128], index: 1, kind: output, shape index: {}]  }
   0x1   :  { %v4_v0 = vld [vmem:[%s22_s0] ss:$0 sm:$0xff] }
   0x2   :  { %5 = vst [vmem:[%s23_s1] sm:$0xf] %v4_v0 }

// kernel: ffn_pallas.1
= control target key start
LH: loop header
LB: loop body
LE: loop exit
PB: predicated region body
PF: predicated region fallthrough
CT: control target
= control target key end

     0   :  { %v865_v1 = vmov 0   ;;  %s1100_s1 = inlined_call_operand.vmem [shape: bf16[128,512], index: 1, kind: input, shape index: {}]   ;;  %s1101_s3 = inlined_call_operand.vmem [shape: bf16[512,128], index: 3, kind: input, shape index: {}]   ;;  %s1102_s0 = inlined_call_operand.vmem [shape: f32[4,128], index: 0, kind: input, shape index: {}]   ;;  %s1103_s2 = inlined_call_operand.vmem [shape: f32[1,512], index: 2, kind: input, shape index: {}]   ;;  %s1104_s4 = inlined_call_operand.vmem [shape: f32[1,128], index: 4, kind: input, shape index: {}]   ;;  %s1105_s5 = inlined_call_operand.vmem [shape: f32[4,128], index: 5, kind: output, shape index: {}]  }
   0x1   :  { %v785_v0 = vld [vmem:[%s1100_s1 + $0x4] ss:$16 sps:$4 sm:$0xff]   ;;  %269 = vmatprep.mubr.bf16.mxu0 %v865_v1  ;;  %310 = vmatprep.mubr.bf16.mxu1 %v865_v1  ;;  %v787_v2 = vld [vmem:[%s1100_s1 + $0xc] ss:$16 sps:$4 sm:$0xff]   ;;  %v789_v3 = vld [vmem:[%s1100_s1] ss:$16 sps:$4 sm:$0xff]  }
   0x2   :  { %237 = vmatprep.subr.bf16.mxu0 %v785_v0  ;;  %v790_v4 = vld [vmem:[%s1100_s1 + $0x8] ss:$16 sps:$4 sm:$0xff]   ;;  %278 = vmatprep.subr.bf16.mxu1 %v787_v2  ;;  %v791_v5 = vld [vmem:[%s1100_s1 + $0x24] ss:$16 sps:$4 sm:$0xff]   ;;  %v793_v6 = vld [vmem:[%s1100_s1 + $0x2c] ss:$16 sps:$4 sm:$0xff]  }
   0x3   :  { %238 = vmatpush1.bf16.msra.mxu0 %v789_v3  ;;  %279 = vmatpush1.bf16.msra.mxu1 %v790_v4  ;;  %v795_v7 = vld [vmem:[%s1100_s1 + $0x20] ss:$16 sps:$4 sm:$0xff]   ;;  %v796_v8 = vld [vmem:[%s1100_s1 + $0x28] ss:$16 sps:$4 sm:$0xff]   ;;  %v797_v9 = vld [vmem:[%s1100_s1 + $0x44] ss:$16 sps:$4 sm:$0xff]   ;;  %v57_v3 = vlaneseq }
   0x4   :  { %239 = vmatprep.subr.bf16.mxu0 %v791_v5  ;;  %280 = vmatprep.subr.bf16.mxu1 %v793_v6  ;;  %v799_v10 = vld [vmem:[%s1100_s1 + $0x4c] ss:$16 sps:$4 sm:$0xff]   ;;  %v801_v11 = vld [vmem:[%s1100_s1 + $0x40] ss:$16 sps:$4 sm:$0xff]   ;;  %v802_v12 = vld [vmem:[%s1100_s1 + $0x48] ss:$16 sps:$4 sm:$0xff]  }
   0x5   :  { %v803_v13 = vld [vmem:[%s1100_s1 + $0x64] ss:$16 sps:$4 sm:$0xff]   ;;  %v805_v14 = vld [vmem:[%s1100_s1 + $0x6c] ss:$16 sps:$4 sm:$0xff]   ;;  %v807_v15 = vld [vmem:[%s1100_s1 + $0x60] ss:$16 sps:$4 sm:$0xff]  }
   0x6   :  { %v808_v16 = vld [vmem:[%s1100_s1 + $0x68] ss:$16 sps:$4 sm:$0xff]   ;;  %v809_v17 = vld [vmem:[%s1100_s1 + $0x84] ss:$16 sps:$4 sm:$0xff]   ;;  %v811_v18 = vld [vmem:[%s1100_s1 + $0x8c] ss:$16 sps:$4 sm:$0xff]  }
   0x7   :  { %240 = vmatpush1.bf16.msra.mxu0 %v795_v7  ;;  %281 = vmatpush1.bf16.msra.mxu1 %v796_v8  ;;  %v813_v19 = vld [vmem:[%s1100_s1 + $0x80] ss:$16 sps:$4 sm:$0xff]   ;;  %v814_v20 = vld [vmem:[%s1100_s1 + $0x88] ss:$16 sps:$4 sm:$0xff]   ;;  %v815_v21 = vld [vmem:[%s1100_s1 + $0xa4] ss:$16 sps:$4 sm:$0xff]  }
   0x8   :  { %241 = vmatprep.subr.bf16.mxu0 %v797_v9  ;;  %282 = vmatprep.subr.bf16.mxu1 %v799_v10  ;;  %v817_v22 = vld [vmem:[%s1100_s1 + $0xac] ss:$16 sps:$4 sm:$0xff]   ;;  %v819_v23 = vld [vmem:[%s1100_s1 + $0xa0] ss:$16 sps:$4 sm:$0xff]   ;;  %v820_v24 = vld [vmem:[%s1100_s1 + $0xa8] ss:$16 sps:$4 sm:$0xff]  }
   0x9   :  { %v821_v25 = vld [vmem:[%s1100_s1 + $0xc4] ss:$16 sps:$4 sm:$0xff]   ;;  %v823_v26 = vld [vmem:[%s1100_s1 + $0xcc] ss:$16 sps:$4 sm:$0xff]   ;;  %v825_v27 = vld [vmem:[%s1100_s1 + $0xc0] ss:$16 sps:$4 sm:$0xff]  }
   0xa   :  { %v826_v28 = vld [vmem:[%s1100_s1 + $0xc8] ss:$16 sps:$4 sm:$0xff]   ;;  %v827_v29 = vld [vmem:[%s1100_s1 + $0xe4] ss:$16 sps:$4 sm:$0xff]   ;;  %v829_v30 = vld [vmem:[%s1100_s1 + $0xec] ss:$16 sps:$4 sm:$0xff]  }
   0xb   :  { %242 = vmatpush1.bf16.msra.mxu0 %v801_v11  ;;  %283 = vmatpush1.bf16.msra.mxu1 %v802_v12  ;;  %v831_v31 = vld [vmem:[%s1100_s1 + $0xe0] ss:$16 sps:$4 sm:$0xff]   ;;  %v832_v32 = vld [vmem:[%s1100_s1 + $0xe8] ss:$16 sps:$4 sm:$0xff]   ;;  %v58_v4 = vshrl.u32 %v57_v3, 7 }
   0xc   :  { %243 = vmatprep.subr.bf16.mxu0 %v803_v13  ;;  %284 = vmatprep.subr.bf16.mxu1 %v805_v14  ;;  %v21_v33 = vld [vmem:[%s1102_s0] sm:$0xf]  ;;  %v837_v39 = vld [vmem:[%s1101_s3 + $0x48] sm:$0xff]   ;;  %v841_v43 = vld [vmem:[%s1101_s3 + $0x50] sm:$0xff]  }
   0xd   :  { %v833_v34 = vld [vmem:[%s1101_s3 + $0x40] sm:$0xff]   ;;  %v22_v37 = vpack.c.bf16 %v21_v33, %v21_v33  ;;  %v838_v40 = vld [vmem:[%s1101_s3 + $0xc8] sm:$0xff]   ;;  %v842_v44 = vld [vmem:[%s1101_s3 + $0xd0] sm:$0xff]   ;;  %v59_v5 = vsub.s32 0, %v58_v4  ;;  %v67_v6 = vsub.s32 2, %v58_v4  ;;  %v63_v8 = vsub.s32 1, %v58_v4 }
   0xe   :  { %v834_v35 = vld [vmem:[%s1101_s3 + $0xc0] sm:$0xff]   ;;  %v839_v41 = vld [vmem:[%s1101_s3 + $0x8] sm:$0xff]   ;;  %v843_v45 = vld [vmem:[%s1101_s3 + $0x10] sm:$0xff]   ;;  %v71_v9 = vsub.s32 3, %v58_v4 }
   0xf   :  { %244 = vmatpush1.bf16.msra.mxu0 %v807_v15  ;;  %285 = vmatpush1.bf16.msra.mxu1 %v808_v16  ;;  %v835_v36 = vld [vmem:[%s1101_s3] sm:$0xff]   ;;  %v840_v42 = vld [vmem:[%s1101_s3 + $0x88] sm:$0xff]   ;;  %v844_v46 = vld [vmem:[%s1101_s3 + $0x90] sm:$0xff]  }
  0x10   :  { %245 = vmatprep.subr.bf16.mxu0 %v809_v17  ;;  %286 = vmatprep.subr.bf16.mxu1 %v811_v18  ;;  %v836_v38 = vld [vmem:[%s1101_s3 + $0x80] sm:$0xff]   ;;  %v845_v47 = vld [vmem:[%s1101_s3 + $0x58] sm:$0xff]   ;;  %v853_v55 = vld [vmem:[%s1101_s3 + $0x68] sm:$0xff]  }
  0x11   :  { %v846_v48 = vld [vmem:[%s1101_s3 + $0xd8] sm:$0xff]   ;;  %v849_v51 = vld [vmem:[%s1101_s3 + $0x60] sm:$0xff]   ;;  %v854_v56 = vld [vmem:[%s1101_s3 + $0xe8] sm:$0xff]  }
  0x12   :  { %v847_v49 = vld [vmem:[%s1101_s3 + $0x18] sm:$0xff]   ;;  %v850_v52 = vld [vmem:[%s1101_s3 + $0xe0] sm:$0xff]   ;;  %v855_v57 = vld [vmem:[%s1101_s3 + $0x28] sm:$0xff]  }
  0x13   :  { %246 = vmatpush1.bf16.msra.mxu0 %v813_v19  ;;  %287 = vmatpush1.bf16.msra.mxu1 %v814_v20  ;;  %v848_v50 = vld [vmem:[%s1101_s3 + $0x98] sm:$0xff]   ;;  %v851_v53 = vld [vmem:[%s1101_s3 + $0x20] sm:$0xff]   ;;  %v856_v58 = vld [vmem:[%s1101_s3 + $0xa8] sm:$0xff]  }
  0x14   :  { %247 = vmatprep.subr.bf16.mxu0 %v815_v21  ;;  %288 = vmatprep.subr.bf16.mxu1 %v817_v22  ;;  %v852_v54 = vld [vmem:[%s1101_s3 + $0xa0] sm:$0xff]   ;;  %v857_v59 = vld [vmem:[%s1101_s3 + $0x70] sm:$0xff]   ;;  %v861_v63 = vld [vmem:[%s1101_s3 + $0x78] sm:$0xff]  }
  0x15   :  { %v858_v60 = vld [vmem:[%s1101_s3 + $0xf0] sm:$0xff]   ;;  %v862_v0 = vld [vmem:[%s1101_s3 + $0xf8] sm:$0xff]   ;;  %v55_v7 = vld [vmem:[%s1103_s2] sm:$0xf] }
  0x16   :  { %v859_v61 = vld [vmem:[%s1101_s3 + $0x30] sm:$0xff]   ;;  %v863_v1 = vld [vmem:[%s1101_s3 + $0x38] sm:$0xff]   ;;  %v60_v10 = vrot.slane %v55_v7, %v59_v5  ;;  %v68_v11 = vrot.slane %v55_v7, %v67_v6  ;;  %v64_v12 = vrot.slane %v55_v7, %v63_v8  ;;  %v72_v13 = vrot.slane %v55_v7, %v71_v9 }
  0x17   :  { %248 = vmatpush1.bf16.msra.mxu0 %v819_v23  ;;  %289 = vmatpush1.bf16.msra.mxu1 %v820_v24  ;;  %v860_v62 = vld [vmem:[%s1101_s3 + $0xb0] sm:$0xff]   ;;  %v864_v2 = vld [vmem:[%s1101_s3 + $0xb8] sm:$0xff]  }
  0x18   :  { %249 = vmatprep.subr.bf16.mxu0 %v821_v25  ;;  %290 = vmatprep.subr.bf16.mxu1 %v823_v26 }
  0x1b   :  { %250 = vmatpush1.bf16.msra.mxu0 %v825_v27  ;;  %291 = vmatpush1.bf16.msra.mxu1 %v826_v28 }
  0x1c   :  { %251 = vmatprep.subr.bf16.mxu0 %v827_v29  ;;  %292 = vmatprep.subr.bf16.mxu1 %v829_v30 }
  0x1f   :  { %252 = vmatpush1.bf16.msra.mxu0 %v831_v31  ;;  %293 = vmatpush1.bf16.msra.mxu1 %v832_v32 }
  0x20   :  { %740 = vmatprep.subr.bf16.mxu0 %v833_v34  ;;  %762 = vmatprep.subr.bf16.mxu1 %v834_v35 }
  0x22   :  { %270 = vmatmul.mubr.bf16.vlgmr.msra.gmra.mrb[0].mxu0 %v22_v37  ;;  %311 = vmatmul.mubr.bf16.vlgmr.msra.gmra.mrb[0].mxu1 %v22_v37 }
  0x23   :  { %741 = vmatpush3.bf16.msra.mxu0 %v835_v36  ;;  %763 = vmatpush3.bf16.msra.mxu1 %v836_v38  ;;  %v707_v36 = vld [vmem:[%s1104_s4] ss:$0 sm:$0xff] }
  0x24   :  { %742 = vmatprep.subr.bf16.mxu0 %v837_v39  ;;  %764 = vmatprep.subr.bf16.mxu1 %v838_v40 }
  0x27   :  { %743 = vmatpush3.bf16.msra.mxu0 %v839_v41  ;;  %765 = vmatpush3.bf16.msra.mxu1 %v840_v42 }
  0x28   :  { %744 = vmatprep.subr.bf16.mxu0 %v841_v43  ;;  %766 = vmatprep.subr.bf16.mxu1 %v842_v44 }
  0x2b   :  { %745 = vmatpush3.bf16.msra.mxu0 %v843_v45  ;;  %767 = vmatpush3.bf16.msra.mxu1 %v844_v46 }
  0x2c   :  { %746 = vmatprep.subr.bf16.mxu0 %v845_v47  ;;  %768 = vmatprep.subr.bf16.mxu1 %v846_v48 }
  0x2f   :  { %747 = vmatpush3.bf16.msra.mxu0 %v847_v49  ;;  %769 = vmatpush3.bf16.msra.mxu1 %v848_v50 }
  0x30   :  { %748 = vmatprep.subr.bf16.mxu0 %v849_v51  ;;  %770 = vmatprep.subr.bf16.mxu1 %v850_v52 }
  0x33   :  { %749 = vmatpush3.bf16.msra.mxu0 %v851_v53  ;;  %771 = vmatpush3.bf16.msra.mxu1 %v852_v54 }
  0x34   :  { %750 = vmatprep.subr.bf16.mxu0 %v853_v55  ;;  %772 = vmatprep.subr.bf16.mxu1 %v854_v56 }
  0x37   :  { %751 = vmatpush3.bf16.msra.mxu0 %v855_v57  ;;  %773 = vmatpush3.bf16.msra.mxu1 %v856_v58 }
  0x38   :  { %752 = vmatprep.subr.bf16.mxu0 %v857_v59  ;;  %774 = vmatprep.subr.bf16.mxu1 %v858_v60 }
  0x3b   :  { %753 = vmatpush3.bf16.msra.mxu0 %v859_v61  ;;  %775 = vmatpush3.bf16.msra.mxu1 %v860_v62 }
  0x3c   :  { %754 = vmatprep.subr.bf16.mxu0 %v861_v63  ;;  %776 = vmatprep.subr.bf16.mxu1 %v862_v0 }
  0x3f   :  { %755 = vmatpush3.bf16.msra.mxu0 %v863_v1  ;;  %777 = vmatpush3.bf16.msra.mxu1 %v864_v2 }
  0xf5   :  { %v271_v14 = vpop.f32.mrb[0].mxu0  ;;  %v312_v15 = vpop.f32.mrb[0].mxu1 }
  0xf6   :  { %v272_v16 = vadd.f32 %v271_v14, %v60_v10  ;;  %v313_v17 = vadd.f32 %v312_v15, %v68_v11  ;;  %v273_v18 = vpop.f32.mrb[1].mxu0  ;;  %v314_v19 = vpop.f32.mrb[1].mxu1 }
  0xf7   :  { %v274_v20 = vadd.f32 %v273_v18, %v64_v12  ;;  %v315_v21 = vadd.f32 %v314_v19, %v72_v13  ;;  %v275_v22 = vpop.f32.mrb[2].mxu0  ;;  %v316_v23 = vpop.f32.mrb[2].mxu1 }
  0xf8   :  { %v319_v24 = vmax.f32 %v272_v16, 0.0  ;;  %v321_v25 = vmax.f32 %v313_v17, 0.0  ;;  %v276_v26 = vpop.f32.mrb[3].mxu0  ;;  %v317_v27 = vpop.f32.mrb[3].mxu1 }
  0xf9   :  { %v320_v28 = vmax.f32 %v274_v20, 0.0  ;;  %v322_v29 = vmax.f32 %v315_v21, 0.0 }
  0xfa   :  { %v325_v30 = vpack.c.bf16 %v321_v25, %v321_v25  ;;  %v323_v33 = vpack.c.bf16 %v319_v24, %v319_v24 }
  0xfb   :  { %v324_v31 = vpack.c.bf16 %v320_v28, %v320_v28  ;;  %v326_v32 = vpack.c.bf16 %v322_v29, %v322_v29 }
  0xfd   :  { %622 = vmatprep.mubr.bf16.mxu0 %v324_v31  ;;  %662 = vmatprep.mubr.bf16.mxu1 %v326_v32 }
  0xfe   :  { %623 = vmatmul.mubr.bf16.vlgmr.msra.gmra.mrb[4].mxu0 %v323_v33  ;;  %663 = vmatmul.mubr.bf16.vlgmr.msra.gmra.mrb[4].mxu1 %v325_v30 }
 0x1d1   :  { %v756_v34 = vpop.f32.mrb[4].mxu0  ;;  %v778_v35 = vpop.f32.mrb[4].mxu1 }
 0x1d2   :  { %v757_v37 = vpop.f32.mrb[5].mxu0  ;;  %v779_v38 = vpop.f32.mrb[5].mxu1 }
 0x1d3   :  { %v758_v39 = vadd.f32 %v757_v37, %v756_v34  ;;  %v780_v40 = vadd.f32 %v779_v38, %v778_v35  ;;  %v759_v41 = vpop.f32.mrb[6].mxu0  ;;  %v781_v42 = vpop.f32.mrb[6].mxu1 }
 0x1d4   :  { %v760_v43 = vpop.f32.mrb[7].mxu0  ;;  %v782_v44 = vpop.f32.mrb[7].mxu1 }
 0x1d5   :  { %v625_v45 = vadd.f32 %v758_v39, %v707_v36 }
 0x1d7   :  { %v665_v46 = vadd.f32 %v780_v40, %v625_v45 }
 0x1d9   :  { %670 = vst [vmem:[%s1105_s5] sm:$0xf] %v665_v46 }

</bundles_post_ra>
